<compile_context>
chip_gen: v6e
topology: v6e:2x2x1
jax: 0.10.0
libtpu: 0.0.40
codegen_flags: <defaults>
</compile_context>

<pallas_src>
import functools

import jax
import jax.numpy as jnp
from jax.experimental import pallas as pl
from jax.experimental.pallas import tpu as pltpu

# Sobel kernels used by the PyTorch module (cross-correlation, no flip).
_KX = ((1.0, 0.0, -1.0),
       (2.0, 0.0, -2.0),
       (1.0, 0.0, -1.0))
_KY = ((1.0, 2.0, 1.0),
       (0.0, 0.0, 0.0),
       (-1.0, -2.0, -1.0))

# Aligned halo padding of the channel-sum scratch: the stored window starts at
# (row 8, lane 128), so every scratch *store* is at sublane/lane-aligned
# offsets, and the 1-pixel zero ring needed by the 3x3 conv lives just outside.
_PR = 8      # top/bottom row padding (multiple of 8 sublanes)
_PC = 128    # left/right lane padding (multiple of 128 lanes)


def _make_kernel(N, C, H, W, alpha, eps):
    inv_count = 1.0 / float(N * H * W)

    def kernel(x_ref, out_ref, sp_ref):
        n = pl.program_id(0)
        c = pl.program_id(1)
        last_n = pl.num_programs(0) - 1
        last_c = pl.num_programs(1) - 1

        # One-time init: zero the halo ring (scratch persists across grid
        # steps; only the interior window is ever rewritten) and the loss.
        @pl.when(jnp.logical_and(n == 0, c == 0))
        def _init():
            sp_ref[...] = jnp.zeros_like(sp_ref)
            out_ref[0, 0] = jnp.float32(0.0)

        # Channel reduction: identical weights across channels means
        # conv(x, K) == conv(sum_c x_c, K).  Native-dtype DMA, f32 accumulate.
        xb = x_ref[0, 0].astype(jnp.float32)                         # (H, W)

        @pl.when(c == 0)
        def _first_channel():
            sp_ref[pl.ds(_PR, H), pl.ds(_PC, W)] = xb

        @pl.when(c > 0)
        def _add_channel():
            sp_ref[pl.ds(_PR, H), pl.ds(_PC, W)] = (
                sp_ref[pl.ds(_PR, H), pl.ds(_PC, W)] + xb)

        # Last channel: separable Sobel + per-image loss contribution.
        @pl.when(c == last_c)
        def _compute():
            # (H+2, W+2) window including the zero halo; w[0, 0] == s[-1, -1].
            w = sp_ref[pl.ds(_PR - 1, H + 2), pl.ds(_PC - 1, W + 2)]

            # gradX = [1,2,1]^T (vertical smooth) x [1,0,-1] (horizontal diff)
            a = w[0:H, :] + 2.0 * w[1:H + 1, :] + w[2:H + 2, :]      # (H, W+2)
            gx = a[:, 0:W] - a[:, 2:W + 2]                           # (H, W)
            # gradY = [1,0,-1]^T (vertical diff) x [1,2,1] (horizontal smooth)
            b = w[:, 0:W] + 2.0 * w[:, 1:W + 1] + w[:, 2:W + 2]      # (H+2, W)
            gy = b[0:H, :] - b[2:H + 2, :]                           # (H, W)

            t = gx * gx + gy * gy + jnp.float32(eps)                 # grad^2
            # grad**alpha == t**(alpha/2); t > 0 is guaranteed by eps.
            if alpha == 2.0:
                val = t
            elif alpha == 1.0:
                val = jnp.sqrt(t)
            else:
                val = jnp.exp(jnp.float32(0.5 * alpha) * jnp.log(t))

            out_ref[0, 0] = out_ref[0, 0] + jnp.sum(val)

        @pl.when(jnp.logical_and(n == last_n, c == last_c))
        def _finalize():
            out_ref[0, 0] = out_ref[0, 0] * jnp.float32(inv_count)

    return kernel


@functools.partial(jax.jit, static_argnames=("alpha", "eps"))
def hyper_laplacian_penalty(x, alpha, eps=1e-6):
    """x: (N, C, H, W) array. Returns the scalar f32 hyper-Laplacian penalty."""
    N, C, H, W = x.shape
    kernel = _make_kernel(N, C, H, W, float(alpha), float(eps))

    grid_spec = pltpu.PrefetchScalarGridSpec(
        num_scalar_prefetch=0,
        grid=(N, C),                                   # C innermost: reduction
        in_specs=[pl.BlockSpec((1, 1, H, W), lambda n, c: (n, c, 0, 0))],
        out_specs=pl.BlockSpec(memory_space=pltpu.MemorySpace.SMEM),
        scratch_shapes=[pltpu.VMEM((H + 2 * _PR, W + 2 * _PC), jnp.float32)],
    )
    out = pl.pallas_call(
        kernel,
        out_shape=jax.ShapeDtypeStruct((1, 1), jnp.float32),
        grid_spec=grid_spec,
        compiler_params=pltpu.CompilerParams(
            # Both axes carry state (channel-sum scratch / scalar loss
            # accumulator), so they must stay sequential.
            dimension_semantics=("arbitrary", "arbitrary")),
    )(x)
    return out[0, 0]


def _reference(x, alpha, eps=1e-6):
    """Pure-JAX reference using lax.conv_general_dilated (NCHW)."""
    N, C, H, W = x.shape
    kx = jnp.asarray(_KX, jnp.float32)
    ky = jnp.asarray(_KY, jnp.float32)
    wx = jnp.broadcast_to(kx, (1, C, 3, 3))            # (O=1, I=C, kH, kW)
    wy = jnp.broadcast_to(ky, (1, C, 3, 3))
    dn = jax.lax.conv_dimension_numbers(x.shape, wx.shape,
                                        ("NCHW", "OIHW", "NCHW"))
    gx = jax.lax.conv_general_dilated(x.astype(jnp.float32), wx,
                                      window_strides=(1, 1),
                                      padding=((1, 1), (1, 1)),
                                      dimension_numbers=dn)
    gy = jax.lax.conv_general_dilated(x.astype(jnp.float32), wy,
                                      window_strides=(1, 1),
                                      padding=((1, 1), (1, 1)),
                                      dimension_numbers=dn)
    grad = jnp.sqrt(gx * gx + gy * gy + eps)
    return jnp.mean(grad ** alpha)


if __name__ == "__main__":
    key = jax.random.PRNGKey(0)
    N, C, H, W = 2, 4, 16, 16
    alpha = 0.5
    x = jax.random.normal(key, (N, C, H, W), dtype=jnp.float32)

    loss = hyper_laplacian_penalty(x, alpha)
    loss = jax.block_until_ready(loss)

    ref = _reference(x, alpha)
    assert jnp.allclose(loss, ref, rtol=1e-5, atol=1e-5), (loss, ref)

    print("KERNEL_OK")
</pallas_src>

<mosaic_0001>
module attributes {stable_mosaic.version = 11 : i64} {
  func.func @kernel(%arg0: i32, %arg1: i32, %arg2: memref<1x1x16x16xf32, #tpu.memory_space<vmem>>, %arg3: memref<1x1xf32, #tpu.memory_space<smem>>, %arg4: memref<32x272xf32, #tpu.memory_space<vmem>>) attributes {dimension_semantics = [#tpu.dimension_semantics<arbitrary>, #tpu.dimension_semantics<arbitrary>], iteration_bounds = array<i64: 2, 4>, scalar_prefetch = 0 : i64, scratch_operands = 1 : i64, tpu.core_type = #tpu.core_type<tc>, window_params = [{transform_indices = @transform_0, window_bounds = array<i64: 1, 1, 16, 16>}, {transform_indices = @transform_1, window_bounds = array<i64: 1, 1>}]} {
    %c0_i32 = arith.constant 0 : i32
    %0 = arith.cmpi eq, %arg0, %c0_i32 : i32
    %c0_i32_0 = arith.constant 0 : i32
    %1 = arith.cmpi eq, %arg1, %c0_i32_0 : i32
    %2 = arith.andi %0, %1 : i1
    %3 = arith.extui %2 : i1 to i32
    %c0_i32_1 = arith.constant 0 : i32
    %4 = arith.cmpi ne, %3, %c0_i32_1 : i32
    scf.if %4 {
      %cst = arith.constant 0.000000e+00 : f32
      %21 = vector.broadcast %cst : f32 to vector<32x272xf32>
      %c0_12 = arith.constant 0 : index
      %c0_13 = arith.constant 0 : index
      %22 = vector.load %arg4[%c0_12, %c0_13] : memref<32x272xf32, #tpu.memory_space<vmem>>, vector<32x272xf32>
      tpu.vector_store %arg4[%c0_12, %c0_13], %21 {strides = array<i32>} : memref<32x272xf32, #tpu.memory_space<vmem>>, vector<32x272xf32>,
      %cst_14 = arith.constant 0.000000e+00 : f32
      %c0_15 = arith.constant 0 : index
      %c0_16 = arith.constant 0 : index
      %23 = memref.load %arg3[%c0_15, %c0_16] : memref<1x1xf32, #tpu.memory_space<smem>>
      memref.store %cst_14, %arg3[%c0_15, %c0_16] : memref<1x1xf32, #tpu.memory_space<smem>>
    } else {
    }
    %c0 = arith.constant 0 : index
    %c0_2 = arith.constant 0 : index
    %c0_3 = arith.constant 0 : index
    %c0_4 = arith.constant 0 : index
    %5 = vector.load %arg2[%c0, %c0_2, %c0_3, %c0_4] : memref<1x1x16x16xf32, #tpu.memory_space<vmem>>, vector<1x1x16x16xf32>
    %6 = vector.shape_cast %5 : vector<1x1x16x16xf32> to vector<16x16xf32>
    %c0_i32_5 = arith.constant 0 : i32
    %7 = arith.cmpi eq, %arg1, %c0_i32_5 : i32
    %8 = arith.extui %7 : i1 to i32
    %c0_i32_6 = arith.constant 0 : i32
    %9 = arith.cmpi ne, %8, %c0_i32_6 : i32
    scf.if %9 {
      %c8 = arith.constant 8 : index
      %c128 = arith.constant 128 : index
      %21 = vector.load %arg4[%c8, %c128] : memref<32x272xf32, #tpu.memory_space<vmem>>, vector<16x16xf32>
      tpu.vector_store %arg4[%c8, %c128], %6 {strides = array<i32>} : memref<32x272xf32, #tpu.memory_space<vmem>>, vector<16x16xf32>,
    } else {
    }
    %c0_i32_7 = arith.constant 0 : i32
    %10 = arith.cmpi sgt, %arg1, %c0_i32_7 : i32
    %11 = arith.extui %10 : i1 to i32
    %c0_i32_8 = arith.constant 0 : i32
    %12 = arith.cmpi ne, %11, %c0_i32_8 : i32
    scf.if %12 {
      %c8 = arith.constant 8 : index
      %c128 = arith.constant 128 : index
      %21 = vector.load %arg4[%c8, %c128] : memref<32x272xf32, #tpu.memory_space<vmem>>, vector<16x16xf32>
      %22 = arith.addf %21, %6 : vector<16x16xf32>
      %c8_12 = arith.constant 8 : index
      %c128_13 = arith.constant 128 : index
      %23 = vector.load %arg4[%c8_12, %c128_13] : memref<32x272xf32, #tpu.memory_space<vmem>>, vector<16x16xf32>
      tpu.vector_store %arg4[%c8_12, %c128_13], %22 {strides = array<i32>} : memref<32x272xf32, #tpu.memory_space<vmem>>, vector<16x16xf32>,
    } else {
    }
    %c3_i32 = arith.constant 3 : i32
    %13 = arith.cmpi eq, %arg1, %c3_i32 : i32
    %14 = arith.extui %13 : i1 to i32
    %c0_i32_9 = arith.constant 0 : i32
    %15 = arith.cmpi ne, %14, %c0_i32_9 : i32
    scf.if %15 {
      %c7 = arith.constant 7 : index
      %c127 = arith.constant 127 : index
      %21 = vector.load %arg4[%c7, %c127] : memref<32x272xf32, #tpu.memory_space<vmem>>, vector<18x18xf32>
      %22 = vector.extract_strided_slice %21 {offsets = [0, 0], sizes = [16, 18], strides = [1, 1]} : vector<18x18xf32> to vector<16x18xf32>
      %23 = vector.extract_strided_slice %21 {offsets = [1, 0], sizes = [16, 18], strides = [1, 1]} : vector<18x18xf32> to vector<16x18xf32>
      %cst = arith.constant 2.000000e+00 : f32
      %24 = vector.broadcast %cst : f32 to vector<16x18xf32>
      %25 = arith.mulf %24, %23 : vector<16x18xf32>
      %26 = arith.addf %22, %25 : vector<16x18xf32>
      %27 = vector.extract_strided_slice %21 {offsets = [2, 0], sizes = [16, 18], strides = [1, 1]} : vector<18x18xf32> to vector<16x18xf32>
      %28 = arith.addf %26, %27 : vector<16x18xf32>
      %29 = vector.extract_strided_slice %28 {offsets = [0, 0], sizes = [16, 16], strides = [1, 1]} : vector<16x18xf32> to vector<16x16xf32>
      %30 = vector.extract_strided_slice %28 {offsets = [0, 2], sizes = [16, 16], strides = [1, 1]} : vector<16x18xf32> to vector<16x16xf32>
      %31 = arith.subf %29, %30 : vector<16x16xf32>
      %32 = vector.extract_strided_slice %21 {offsets = [0, 0], sizes = [18, 16], strides = [1, 1]} : vector<18x18xf32> to vector<18x16xf32>
      %33 = vector.extract_strided_slice %21 {offsets = [0, 1], sizes = [18, 16], strides = [1, 1]} : vector<18x18xf32> to vector<18x16xf32>
      %cst_12 = arith.constant 2.000000e+00 : f32
      %34 = vector.broadcast %cst_12 : f32 to vector<18x16xf32>
      %35 = arith.mulf %34, %33 : vector<18x16xf32>
      %36 = arith.addf %32, %35 : vector<18x16xf32>
      %37 = vector.extract_strided_slice %21 {offsets = [0, 2], sizes = [18, 16], strides = [1, 1]} : vector<18x18xf32> to vector<18x16xf32>
      %38 = arith.addf %36, %37 : vector<18x16xf32>
      %39 = vector.extract_strided_slice %38 {offsets = [0, 0], sizes = [16, 16], strides = [1, 1]} : vector<18x16xf32> to vector<16x16xf32>
      %40 = vector.extract_strided_slice %38 {offsets = [2, 0], sizes = [16, 16], strides = [1, 1]} : vector<18x16xf32> to vector<16x16xf32>
      %41 = arith.subf %39, %40 : vector<16x16xf32>
      %42 = arith.mulf %31, %31 : vector<16x16xf32>
      %43 = arith.mulf %41, %41 : vector<16x16xf32>
      %44 = arith.addf %42, %43 : vector<16x16xf32>
      %cst_13 = arith.constant 9.99999997E-7 : f32
      %45 = vector.broadcast %cst_13 : f32 to vector<16x16xf32>
      %46 = arith.addf %44, %45 : vector<16x16xf32>
      %47 = math.log %46 : vector<16x16xf32>
      %cst_14 = arith.constant 2.500000e-01 : f32
      %48 = vector.broadcast %cst_14 : f32 to vector<16x16xf32>
      %49 = arith.mulf %48, %47 : vector<16x16xf32>
      %50 = math.exp %49 : vector<16x16xf32>
      %c0_15 = arith.constant 0 : index
      %c0_16 = arith.constant 0 : index
      %51 = memref.load %arg3[%c0_15, %c0_16] : memref<1x1xf32, #tpu.memory_space<smem>>
      %52 = vector.shape_cast %50 : vector<16x16xf32> to vector<1x16x16xf32>
      %cst_17 = arith.constant dense<0.000000e+00> : vector<1xf32>
      %53 = vector.multi_reduction <add>, %52, %cst_17 [1, 2] : vector<1x16x16xf32> to vector<1xf32>
      %54 = vector.shape_cast %53 : vector<1xf32> to vector<1x1x1xf32>
      %55 = vector.extract %54[0, 0, 0] : f32 from vector<1x1x1xf32>
      %56 = arith.addf %51, %55 : f32
      %c0_18 = arith.constant 0 : index
      %c0_19 = arith.constant 0 : index
      %57 = memref.load %arg3[%c0_18, %c0_19] : memref<1x1xf32, #tpu.memory_space<smem>>
      memref.store %56, %arg3[%c0_18, %c0_19] : memref<1x1xf32, #tpu.memory_space<smem>>
    } else {
    }
    %c1_i32 = arith.constant 1 : i32
    %16 = arith.cmpi eq, %arg0, %c1_i32 : i32
    %c3_i32_10 = arith.constant 3 : i32
    %17 = arith.cmpi eq, %arg1, %c3_i32_10 : i32
    %18 = arith.andi %16, %17 : i1
    %19 = arith.extui %18 : i1 to i32
    %c0_i32_11 = arith.constant 0 : i32
    %20 = arith.cmpi ne, %19, %c0_i32_11 : i32
    scf.if %20 {
      %c0_12 = arith.constant 0 : index
      %c0_13 = arith.constant 0 : index
      %21 = memref.load %arg3[%c0_12, %c0_13] : memref<1x1xf32, #tpu.memory_space<smem>>
      %cst = arith.constant 0.001953125 : f32
      %22 = arith.mulf %21, %cst : f32
      %c0_14 = arith.constant 0 : index
      %c0_15 = arith.constant 0 : index
      %23 = memref.load %arg3[%c0_14, %c0_15] : memref<1x1xf32, #tpu.memory_space<smem>>
      memref.store %22, %arg3[%c0_14, %c0_15] : memref<1x1xf32, #tpu.memory_space<smem>>
    } else {
    }
    return
  }
  func.func @transform_0(%arg0: i32, %arg1: i32) -> (i32, i32, i32, i32) {
    %c0_i32 = arith.constant 0 : i32
    %c0_i32_0 = arith.constant 0 : i32
    %c0_i32_1 = arith.constant 0 : i32
    return %arg0, %arg1, %c0_i32, %c0_i32_0 : i32, i32, i32, i32
  }
  func.func @transform_1(%arg0: i32, %arg1: i32) -> (i32, i32) {
    %c0_i32 = arith.constant 0 : i32
    %c0_i32_0 = arith.constant 0 : i32
    %c0_i32_1 = arith.constant 0 : i32
    return %c0_i32, %c0_i32_0 : i32, i32
  }
}

</mosaic_0001>

<bundles_post_ra>
// kernel: hyper_laplacian_penalty.1
= control target key start
LH: loop header
LB: loop body
LE: loop exit
PB: predicated region body
PF: predicated region fallthrough
CT: control target
= control target key end

     0   :  { %6 = vsyncpa [#allocation4], 0  ;;  %s939_s0 = inlined_call_operand.hbm [shape: f32[2,4,16,16], index: 0, kind: input, shape index: {}]   ;;  %s940_s1 = inlined_call_operand.hbm [shape: f32[1,1], index: 1, kind: output, shape index: {}]  }
   0x1   :  { %8 = vsyncpa [#allocation4 + $0x1], 0 }
   0x2   :  { %9 = vsyncpa [#allocation5], 0  ;;  %s777_s6 = smov 0   ;;  %s779_s7 = smov 0  }
   0x3   :  { %s781_s8 = smov 0   ;;  %s783_s9 = smov 0  }
   0x4   :  { %s785_s10 = smov 0   ;;  %s787_s11 = smov 0  }
   0x5   :  { %s789_s12 = smov 0   ;;  %s791_s13 = smov 0  }
   0x6 LB: > { %s519_s14 = sadd.s32 4294967295, %s756_s13   ;;  %s24_s15 = sadd.s32 1, %s748_s11  ;;  %s756_s13 = sphi %s791_s13, %s15_s13   ;;  %s752_s12 = sphi %s789_s12, %s950_s12   ;;  %s748_s11 = sphi %s787_s11, %s949_s11   ;;  %s744_s10 = sphi %s785_s10, %s948_s10   ;;  %s740_s9 = sphi %s783_s9, %s947_s9   ;;  %s736_s8 = sphi %s781_s8, %s946_s8   ;;  %s732_s7 = sphi %s779_s7, %s945_s7   ;;  %s728_s6 = sphi %s777_s6, %s944_s6  }
   0x7   : > { %p25_p0 = scmp.ge.s32.totalorder %s24_s15, 4  ;;  %s27_s16 = sadd.s32 1, %s752_s12 }
   0x8   : > { %s36_s17 = sadd.s32 1, %s736_s8  ;;  %p43_p1 = scmp.ne.s32.totalorder %s736_s8, %s732_s7 }
   0x9   : > { %s952_s15 = smov (%p25_p0, %s24_s15), 0  ;;  %s954_s16 = smov (!%p25_p0, %s27_s16), %s752_s12 }
   0xa   : > { %s32_s18 = ssub.s32 %s748_s11, %s952_s15  ;;  %p44_p2 = scmp.eq.s32.totalorder %s756_s13, 0 }
   0xb   : > { %p29_p3 = scmp.ge.s32.totalorder %s954_s16, 2  ;;  %p49_p4 = scmp.ne.s32.totalorder %s732_s7, %s728_s6 }
   0xc   : > { %p828_p5 = por %p44_p2, %p43_p1  ;;  %p50_p6 = scmp.eq.s32.totalorder %s519_s14, 0 }
   0xd   : > { %s956_s16 = smov (%p29_p3, %s954_s16), 0  ;;  %p549_p8 = scmp.lt.s32.totalorder %s756_s13, 8 }
   0xe   : > { %p836_p7 = por %p50_p6, %p49_p4  ;;  %s31_s21 = ssub.s32 %s752_s12, %s956_s16 }
   0xf   : > { %s33_s22 = sor.u32 %s32_s18, %s31_s21  ;;  %s94_s23 = sand.u32 1, %s736_s8  }
  0x10   : > { %p34_p9 = scmp.eq.s32.totalorder %s33_s22, 0  ;;  %s522_s24 = sshll.u32 %s94_s23, 4 }
  0x11   : > { %s523_s25 = sshll.u32 %s748_s11, 1  ;;  %s524_s27 = sshll.u32 %s752_s12, 3 }
  0x12   : > { %s846_s26 = scalar_select %p34_p9, %s736_s8, %s36_s17  }
  0x13   : > { %s104_s28 = sadd.s32 %s524_s27, %s523_s25  ;;  %s98_s29 = scalar_lea.vmem [#allocation3], %s522_s24 }
  0x14   : > { %s107_s30 = sshll.u32 %s98_s29, 4  ;;  %s525_s2 = sshll.u32 %s104_s28, 7  ;;  %s108_s30 = int_to_ptr.vmem [resolvable:$true] %s107_s30 }
  0x15   : > { %s106_s5 = scalar_lea.hbm %s939_s0, %s525_s2  ;;  %p856_p10 = pnand %p549_p8, %p828_p5 }
  0x16   : > { %p526_p11 = scmp.ge.s32.totalorder %s756_s13, 1  ;;  %s95_s17 = scalar_lea.sflag [#allocation4], %s94_s23 }
  0x17   : > { %p650_p12 = pneg %p856_p10  ;;  %s661_s18 = scalar_lea.vmem %s108_s30, 256 }
  0x18   : > { %p662_p13 = scmp.ne.s32.totalorder %s108_s30, %s661_s18  ;;  %s758_s21 = smov [#allocation3]  }
  0x19   : > { %s666_s22 = sshll.u32 %s758_s21, 4  ;;  %s667_s22 = int_to_ptr.vmem [resolvable:$false] %s666_s22 }
  0x1a   : > { %p664_p0 = pnand %p662_p13, %p650_p12  ;;  %s668_s24 = scalar_lea.vmem %s667_s22, 512 }
  0x1b   : > { %p669_p2 = scmp.lt.s32.totalorder %s108_s30, %s667_s22  ;;  %p670_p3 = scmp.lt.s32.totalorder %s668_s24, %s661_s18 }
  0x1c   : > { %p665_p1 = pneg %p664_p0 }
  0x1d   : > { %p671_p4 = por %p670_p3, %p669_p2 }
  0x1f   : > { %p672_p5 = pnand %p671_p4, %p665_p1 }
  0x21   : > { %675 = shalt.err (!%p672_p5)
}
  0x22   : > { %s759_s19 = smov 128   ;;  %s760_s23 = smov 8  }
  0x23   : > { %548 = dma.hbm_to_vmem [thread:$0]  (!%p856_p10), %s106_s5, 256, %s108_s30, %s95_s17, %s759_s19, %s759_s19, %s760_s23  }
  0x24   : > { %p115_p6 = scmp.lt.s32.totalorder %s756_s13, 9 }
  0x26   : > { %p116_p8 = pnand %p526_p11, %p115_p6 }
  0x27   : > { %s121_s25 = sand.u32 (!%p116_p8), 1, %s732_s7  }
  0x28   : > { %119 = sbr.rel (%p116_p8) target bundleno = 608 (0x260), region = 24  ;;  %s527_s27 = sshll.u32 (!%p116_p8), %s121_s25, 4 }
  0x29   : > { %s122_s28 = scalar_lea.sflag (!%p116_p8), [#allocation4], %s121_s25  ;;  %s125_s29 = scalar_lea.vmem (!%p116_p8), [#allocation3], %s527_s27 }
  0x2d   : > { %719 = dma.done.wait (%p836_p7), %s122_s28, 256  }
  0x2e   : > { %721 = vsyncadd (%p836_p7), %s122_s28, 4294967040  ;;  %p139_p9 = scmp.eq.s32.totalorder %s744_s10, 0  ;;  %p140_p12 = scmp.eq.s32.totalorder %s740_s9, 0 }
  0x30   : > { %p141_p10 = pnand %p140_p12, %p139_p9 }
  0x31   : > { %s762_s30 = smov (!%p141_p10), 0.0  }
  0x32   : > { %144 = sbr.rel (%p141_p10) target bundleno = 60 (0x3c), region = 32  ;;  %159 = sst [smem:[#allocation6]] (!%p141_p10), %s762_s30 }
  0x37   : > { %v761_v0 = vmov 0.0  }
  0x38   : > { %145 = vst [vmem:[#allocation2] sm:$0xff] %v761_v0  ;;  %146 = vst [vmem:[#allocation2 + $0x8] sm:$0xff] %v761_v0 }
  0x39   : > { %149 = vst [vmem:[#allocation2 + $0x18] sm:$0xff] %v761_v0  ;;  %150 = vst [vmem:[#allocation2 + $0x20] sm:$0xff] %v761_v0 }
  0x3a   : > { %152 = vst [vmem:[#allocation2 + $0x30] sm:$0xff] %v761_v0  ;;  %153 = vst [vmem:[#allocation2 + $0x38] sm:$0xff] %v761_v0 }
  0x3b   : > { %155 = vst [vmem:[#allocation2 + $0x48] sm:$0xff] %v761_v0  ;;  %156 = vst [vmem:[#allocation2 + $0x50] sm:$0xff] %v761_v0 }
  0x3c PF: > { %v160_v1 = vld [vmem:[%s125_s29] sm:$0xff]  ;;  %v161_v2 = vld [vmem:[%s125_s29 + $0x8] sm:$0xff]  ;;  %p528_p7 = scmp.ne.s32.totalorder %s740_s9, 0 }
  0x3e   : > { %164 = sbr.rel (%p528_p7) target bundleno = 69 (0x45), region = 36 }
  0x43   : > { %vm165_vm0 = vcmask 130048  }
  0x44   : > { %166 = vst.msk [vmem:[#allocation2 + $0x20] sm:$0xff] %vm165_vm0, %v160_v1  ;;  %167 = vst.msk [vmem:[#allocation2 + $0x38] sm:$0xff] %vm165_vm0, %v161_v2 }
  0x45 PF: > { %p529_p11 = scmp.le.s32.totalorder %s740_s9, 0 }
  0x47   : > { %171 = sbr.rel (%p529_p11) target bundleno = 80 (0x50), region = 40 }
  0x4c   : > { %v172_v3 = vld [vmem:[#allocation2 + $0x20] sm:$0xff]  ;;  %vm176_vm1 = vcmask 130048   ;;  %v173_v4 = vld [vmem:[#allocation2 + $0x38] sm:$0xff] }
  0x4d   : > { %v174_v5 = vadd.f32 %v172_v3, %v160_v1  ;;  %v175_v6 = vadd.f32 %v173_v4, %v161_v2 }
  0x4f   : > { %177 = vst.msk [vmem:[#allocation2 + $0x20] sm:$0xff] %vm176_vm1, %v174_v5  ;;  %178 = vst.msk [vmem:[#allocation2 + $0x38] sm:$0xff] %vm176_vm1, %v175_v6 }
  0x50 PF: > { %p179_p13 = scmp.eq.s32.totalorder %s740_s9, 3  ;;  %p530_p0 = scmp.ne.s32.totalorder %s740_s9, 3 }
  0x51   : > { %s763_s20 = smov (!%p530_p0), 127   ;;  %s764_s2 = smov (!%p530_p0), 126  }
  0x52   : > { %182 = sbr.rel (%p530_p0) target bundleno = 595 (0x253), region = 44  ;;  %s765_s3 = smov (!%p530_p0), 1  }
  0x53   : > { %s392_s4 = sld [smem:[#allocation6]] (!%p530_p0) }
  0x57   : > { %v190_v7 = vld [vmem:[#allocation2 + $0x50] sm:$0x1]  ;;  %v186_v8 = vld [vmem:[#allocation2 + $0x20] sm:$0xff]  ;;  %v188_v9 = vld [vmem:[#allocation2 + $0x38] sm:$0xff]  ;;  %vm199_vm2 = vcmask 1046528   ;;  %vm224_vm3 = vcmask 1045504  }
  0x58   : > { %v266_v10 = vmul.f32 2.0, %v190_v7  ;;  %v192_v11 = vmul.f32 2.0, %v186_v8  ;;  %v194_v12 = vmul.f32 2.0, %v188_v9  ;;  %v879_v15 = vld [vmem:[#allocation2 + $0x8] sm:$0x80]  ;;  %v226_v17 = vrot.slane %v186_v8, 2 }
  0x59   : > { %v229_v18 = vrot.slane %v188_v9, 2  ;;  %v265_v19 = vmul.f32 2.0, %v879_v15  ;;  %v233_v23 = vrot.slane %v190_v7, 2  ;;  %v185_v29 = vld [vmem:[#allocation2 + $0x18] sm:$0xff]  ;;  %v187_v30 = vld [vmem:[#allocation2 + $0x30] sm:$0xff]  ;;  %vm399_vm4 = vcmask 1040384  }
  0x5a   : > { %275 = vrot.lane.b32.xlu1 %v266_v10, %s763_s20  ;;  %271 = vrot.lane.b32.xlu0 %v192_v11, %s763_s20  ;;  %v201_v13 = vrot.slane %v192_v11, 1  ;;  %v204_v14 = vrot.slane %v194_v12, 1  ;;  %v193_v31 = vmul.f32 2.0, %v187_v30  ;;  %v191_v32 = vmul.f32 2.0, %v185_v29  ;;  %v189_v37 = vld [vmem:[#allocation2 + $0x48] sm:$0x1] }
  0x5b   : > { %v230_v22 = vsel %vm224_vm3, %v226_v17, %v229_v18  ;;  %v234_v27 = vsel %vm224_vm3, %v229_v18, %v233_v23  ;;  %v231_v40 = vrot.slane %v189_v37, 2  ;;  %v183_v41 = vld [vmem:[#allocation2] sm:$0x80]  ;;  %v225_v45 = vrot.slane %v185_v29, 2 }
  0x5c   : > { %v205_v16 = vsel %vm199_vm2, %v201_v13, %v204_v14  ;;  %v213_v21 = vadd.f32 %v201_v13, %v879_v15  ;;  %v217_v26 = vadd.f32 %v204_v14, %v188_v9  ;;  %v202_v35 = vrot.slane %v193_v31, 1 }
  0x5d   : > { %v215_v20 = vadd.f32 %v205_v16, %v186_v8  ;;  %v200_v36 = vrot.slane %v191_v32, 1  ;;  %v227_v46 = vrot.slane %v187_v30, 2  ;;  %vm418_vm5 = vcmask 7168  }
  0x5e   : > { %292 = vrot.lane.b32.xlu1 %v186_v8, %s764_s2  ;;  %273 = vrot.lane.b32.xlu0 %v194_v12, %s763_s20  ;;  %v888_v25 = vadd.f32 %v226_v17, %v213_v21  ;;  %v893_v28 = vadd.f32 %v234_v27, %v217_v26  ;;  %vm423_vm6 = vcmask 130048  }
  0x5f   : > { %v886_v24 = vadd.f32 %v230_v22, %v215_v20  ;;  %v203_v42 = vsel %vm199_vm2, %v200_v36, %v202_v35  ;;  %v212_v55 = vadd.f32 %v200_v36, %v183_v41  ;;  %v228_v61 = vsel %vm224_vm3, %v225_v45, %v227_v46 }
  0x60   : > { %v214_v56 = vadd.f32 %v203_v42, %v185_v29  ;;  %v232_v11 = vsel %vm224_vm3, %v227_v46, %v231_v40 }
  0x61   : > { %v241_v6 = vadd.f32 %v225_v45, %v212_v55 }
  0x62   : > { %296 = vrot.lane.b32.xlu1 %v190_v7, %s764_s2  ;;  %294 = vrot.lane.b32.xlu0 %v188_v9, %s764_s2  ;;  %v243_v10 = vadd.f32 %v228_v61, %v214_v56 }
  0x66   : > { %290 = vrot.lane.b32.xlu1 %v879_v15, %s764_s2  ;;  %269 = vrot.lane.b32.xlu0 %v265_v19, %s763_s20 }
  0x6a   : > { %252 = vrot.lane.b32.xlu1 %v886_v24, %s764_s2  ;;  %250 = vrot.lane.b32.xlu0 %v888_v25, %s764_s2 }
  0x6e   : > { %254 = vrot.lane.b32.xlu0 %v893_v28, %s764_s2 }
  0xcc   : > { %v276_v33 = vpop.permute.xlu1 %275  ;;  %v272_v34 = vpop.permute.xlu0 %271 }
  0xcd   : > { %v283_v43 = vadd.f32 %v272_v34, %v185_v29  ;;  %v284_v44 = vadd.f32 %v272_v34, %v186_v8  ;;  %v287_v47 = vadd.f32 %v276_v33, %v189_v37  ;;  %v288_v48 = vadd.f32 %v276_v33, %v190_v7 }
  0xce   : > { %v216_v7 = vadd.f32 %v202_v35, %v187_v30 }
  0xd0   : > { %v293_v38 = vpop.permute.xlu1 %292  ;;  %v274_v39 = vpop.permute.xlu0 %273  ;;  %v245_v23 = vadd.f32 %v232_v11, %v216_v7 }
  0xd1   : > { %v285_v49 = vadd.f32 %v274_v39, %v187_v30  ;;  %v286_v50 = vadd.f32 %v274_v39, %v188_v9  ;;  %v304_v51 = vadd.f32 %v293_v38, %v283_v43  ;;  %v305_v52 = vadd.f32 %v293_v38, %v284_v44 }
  0xd3   : > { %v316_v2 = vrot.slane %v304_v51, 2  ;;  %v317_v3 = vrot.slane %v305_v52, 2 }
  0xd4   : > { %v297_v53 = vpop.permute.xlu1 %296  ;;  %v295_v54 = vpop.permute.xlu0 %294 }
  0xd5   : > { %v308_v57 = vadd.f32 %v297_v53, %v287_v47  ;;  %v309_v58 = vadd.f32 %v297_v53, %v288_v48  ;;  %v306_v59 = vadd.f32 %v295_v54, %v285_v49  ;;  %v307_v60 = vadd.f32 %v295_v54, %v286_v50 }
  0xd7   : > { %v322_v62 = vrot.slane %v308_v57, 2  ;;  %v324_v63 = vrot.slane %v309_v58, 2  ;;  %v318_v0 = vrot.slane %v306_v59, 2  ;;  %v320_v1 = vrot.slane %v307_v60, 2 }
  0xd8   : > { %v291_v4 = vpop.permute.xlu1 %290  ;;  %v270_v5 = vpop.permute.xlu0 %269 }
  0xd9   : > { %v281_v8 = vadd.f32 %v270_v5, %v183_v41  ;;  %v282_v9 = vadd.f32 %v270_v5, %v879_v15  ;;  %v323_v12 = vsel %vm224_vm3, %v318_v0, %v322_v62  ;;  %v325_v13 = vsel %vm224_vm3, %v320_v1, %v324_v63 }
  0xda   : > { %v319_v14 = vsel %vm224_vm3, %v316_v2, %v318_v0  ;;  %v321_v16 = vsel %vm224_vm3, %v317_v3, %v320_v1  ;;  %v336_v26 = vsub.f32 %v306_v59, %v323_v12  ;;  %v337_v15 = vsub.f32 %v307_v60, %v325_v13 }
  0xdb   : > { %v302_v17 = vadd.f32 %v291_v4, %v281_v8  ;;  %v303_v18 = vadd.f32 %v291_v4, %v282_v9  ;;  %v334_v19 = vsub.f32 %v304_v51, %v319_v14  ;;  %v335_v20 = vsub.f32 %v305_v52, %v321_v16 }
  0xdc   : > { %v253_v21 = vpop.permute.xlu1 %252  ;;  %v251_v22 = vpop.permute.xlu0 %250  ;;  %v349_v49 = vmul.f32 %v337_v15, %v337_v15 }
  0xdd   : > { %v332_v27 = vsub.f32 %v302_v17, %v316_v2  ;;  %v333_v29 = vsub.f32 %v303_v18, %v317_v3  ;;  %v261_v30 = vsub.f32 %v243_v10, %v253_v21  ;;  %v262_v31 = vsub.f32 %v886_v24, %v253_v21 }
  0xde   : > { %v259_v32 = vsub.f32 %v241_v6, %v251_v22  ;;  %v260_v33 = vsub.f32 %v888_v25, %v251_v22  ;;  %v346_v34 = vmul.f32 %v334_v19, %v334_v19  ;;  %v347_v35 = vmul.f32 %v335_v20, %v335_v20 }
  0xdf   : > { %v345_v36 = vmul.f32 %v333_v29, %v333_v29  ;;  %v344_v37 = vmul.f32 %v332_v27, %v332_v27  ;;  %v340_v38 = vmul.f32 %v261_v30, %v261_v30  ;;  %v341_v39 = vmul.f32 %v262_v31, %v262_v31 }
  0xe0   : > { %v338_v40 = vmul.f32 %v259_v32, %v259_v32  ;;  %v339_v41 = vmul.f32 %v260_v33, %v260_v33  ;;  %v255_v42 = vpop.permute.xlu0 %254  ;;  %v348_v24 = vmul.f32 %v336_v26, %v336_v26 }
  0xe1   : > { %v263_v43 = vsub.f32 %v245_v23, %v255_v42  ;;  %v264_v44 = vsub.f32 %v893_v28, %v255_v42  ;;  %v352_v45 = vadd.f32 %v346_v34, %v340_v38  ;;  %v353_v46 = vadd.f32 %v347_v35, %v341_v39 }
  0xe2   : > { %v350_v47 = vadd.f32 %v344_v37, %v338_v40  ;;  %v351_v48 = vadd.f32 %v345_v36, %v339_v41 }
  0xe3   : > { %v342_v50 = vmul.f32 %v263_v43, %v263_v43  ;;  %v343_v25 = vmul.f32 %v264_v44, %v264_v44  ;;  %v358_v51 = vadd.f32 1e-06, %v352_v45  ;;  %v359_v52 = vadd.f32 1e-06, %v353_v46 }
  0xe4   : > { %v356_v53 = vadd.f32 1e-06, %v350_v47  ;;  %v357_v54 = vadd.f32 1e-06, %v351_v48 }
  0xe5   : > { %v354_v55 = vadd.f32 %v348_v24, %v342_v50  ;;  %v355_v56 = vadd.f32 %v349_v49, %v343_v25  ;;  %624 = vlog2.f32 %v358_v51 }
  0xe6   : > { %626 = vlog2.f32 %v359_v52 }
  0xe7   : > { %v360_v57 = vadd.f32 1e-06, %v354_v55  ;;  %v361_v58 = vadd.f32 1e-06, %v355_v56  ;;  %628 = vlog2.f32 %v356_v53 }
  0xe8   : > { %630 = vlog2.f32 %v357_v54 }
  0xe9   : > { %632 = vlog2.f32 %v360_v57 }
  0xea   : > { %634 = vlog2.f32 %v361_v58 }
  0xf2   : > { %v625_v28 = vpop.eup %624 }
  0xf3   : > { %v627_v59 = vpop.eup %626  ;;  %v367_v60 = vmul.f32 0.6931472, %v625_v28 }
  0xf4   : > { %v629_v61 = vpop.eup %628  ;;  %v369_v62 = vmul.f32 0.6931472, %v627_v59 }
  0xf5   : > { %v631_v63 = vpop.eup %630  ;;  %v376_v0 = vmul.f32 0.25, %v367_v60  ;;  %v363_v1 = vmul.f32 0.6931472, %v629_v61 }
  0xf6   : > { %v633_v2 = vpop.eup %632  ;;  %v377_v3 = vmul.f32 0.25, %v369_v62  ;;  %v365_v4 = vmul.f32 0.6931472, %v631_v63 }
  0xf7   : > { %v635_v5 = vpop.eup %634  ;;  %v384_v6 = vmul.f32 1.442695, %v376_v0  ;;  %v374_v7 = vmul.f32 0.25, %v363_v1  ;;  %v371_v8 = vmul.f32 0.6931472, %v633_v2 }
  0xf8   : > { %v386_v9 = vmul.f32 1.442695, %v377_v3  ;;  %v375_v10 = vmul.f32 0.25, %v365_v4  ;;  %v373_v11 = vmul.f32 0.6931472, %v635_v5 }
  0xf9   : > { %v380_v12 = vmul.f32 1.442695, %v374_v7  ;;  %v378_v13 = vmul.f32 0.25, %v371_v8  ;;  %636 = vpow2.f32 %v384_v6 }
  0xfa   : > { %v382_v14 = vmul.f32 1.442695, %v375_v10  ;;  %v379_v16 = vmul.f32 0.25, %v373_v11  ;;  %638 = vpow2.f32 %v386_v9 }
  0xfb   : > { %v388_v17 = vmul.f32 1.442695, %v378_v13  ;;  %640 = vpow2.f32 %v380_v12 }
  0xfc   : > { %v390_v18 = vmul.f32 1.442695, %v379_v16  ;;  %642 = vpow2.f32 %v382_v14 }
  0xfd   : > { %644 = vpow2.f32 %v388_v17 }
  0xfe   : > { %646 = vpow2.f32 %v390_v18 }
 0x106   : > { %v637_v19 = vpop.eup %636 }
 0x107   : > { %v639_v20 = vpop.eup %638  ;;  %v401_v21 = vrot.slane %v637_v19, 7 }
 0x108   : > { %v641_v22 = vpop.eup %640  ;;  %v404_v23 = vrot.slane %v639_v20, 7 }
 0x109   : > { %v643_v26 = vpop.eup %642  ;;  %v400_v15 = vrot.slane %v641_v22, 7 }
 0x10a   : > { %v645_v27 = vpop.eup %644  ;;  %v403_v29 = vrot.slane %v643_v26, 7 }
 0x10b   : > { %v647_v30 = vpop.eup %646  ;;  %v402_v31 = vsel %vm399_vm4, %v400_v15, %v401_v21  ;;  %v406_v32 = vrot.slane %v645_v27, 7 }
 0x10c   : > { %v405_v33 = vsel %vm399_vm4, %v403_v29, %v404_v23  ;;  %410 = vrot.lane.b32.xlu1 %v402_v31, %s765_s3  ;;  %v408_v34 = vrot.slane %v647_v30, 7 }
 0x10d   : > { %412 = vrot.lane.b32.xlu0 %v405_v33, %s765_s3  ;;  %v407_v35 = vsel %vm399_vm4, %v401_v21, %v406_v32 }
 0x10e   : > { %v409_v36 = vsel %vm399_vm4, %v404_v23, %v408_v34 }
 0x110   : > { %414 = vrot.lane.b32.xlu1 %v407_v35, %s765_s3 }
 0x111   : > { %416 = vrot.lane.b32.xlu0 %v409_v36, %s765_s3 }
 0x17e   : > { %v411_v37 = vpop.permute.xlu1 %410 }
 0x17f   : > { %v413_v38 = vpop.permute.xlu0 %412 }
 0x180   : > { %v419_v39 = vsel %vm418_vm5, %v411_v37, %v413_v38 }
 0x181   : > { %v424_v43 = vsel %vm423_vm6, %v419_v39, 0.0 }
 0x182   : > { %v415_v40 = vpop.permute.xlu1 %414 }
 0x183   : > { %v417_v41 = vpop.permute.xlu0 %416 }
 0x184   : > { %v420_v42 = vsel %vm418_vm5, %v415_v40, %v417_v41 }
 0x185   : > { %v425_v44 = vsel %vm423_vm6, %v420_v42, 0.0 }
 0x186   : > { %v426_v45 = vadd.f32 %v425_v44, %v424_v43 }
 0x188   : > { %427 = vadd.xlane.f32.xlu1 %v426_v45 }
 0x211   : > { %v428_v46 = vpop.xlane.xlu1 %427 }
 0x212   : > { %v429_v47 = vrot.slane %v428_v46, 4 }
 0x214   : > { %v430_v48 = vadd.f32 %v429_v47, %v428_v46 }
 0x216   : > { %v431_v24 = vrot.slane %v430_v48, 2 }
 0x218   : > { %v432_v49 = vadd.f32 %v431_v24, %v430_v48 }
 0x21a   : > { %v433_v50 = vrot.slane %v432_v49, 1 }
 0x21c   : > { %v434_v25 = vadd.f32 %v433_v50, %v432_v49 }
 0x21e   : > { %535 = vpush %v434_v25 }
 0x24f   : > { %s536_s5 = spop %535 }
 0x250   : > { %s436_s6 = sadd.f32 %s536_s5, %s392_s4 }
 0x252   : > { %438 = sst [smem:[#allocation6]] %s436_s6 }
 0x253 PF: > { %p439_p1 = scmp.eq.s32.totalorder %s744_s10, 1  ;;  %s444_s17 = sld [smem:[#allocation6]] }
 0x254   : > { %p550_p3 = scmp.eq.s32.totalorder %s519_s14, 7  ;;  %s766_s21 = smov [#allocation6]  }
 0x255   : > { %p440_p2 = pnand %p439_p1, %p179_p13 }
 0x259   : > { %s445_s18 = smul.f32 0.001953125, %s444_s17 }
 0x25b   : > { %540 = sst [smem:[#allocation6]] (!%p440_p2), %s445_s18 }
 0x25c   : > { %542 = dma.smem_to_hbm (%p550_p3), %s766_s21, 16, %s940_s1, [#allocation5]  }
 0x25d   : > { %723 = dma.done.wait (%p550_p3), [#allocation5], 16  }
 0x25e   : > { %725 = vsyncadd (%p550_p3), [#allocation5], 4294967280 }
 0x25f   : > { %461 = sfence }
 0x260 PF: > { %s15_s13 = sadd.s32 1, %s756_s13   ;;  %s944_s6 = smov %s732_s7 }
 0x261   : > { %p12_p4 = scmp.ge.s32.totalorder %s15_s13, 10   ;;  %s945_s7 = smov %s736_s8 }
 0x262   : > { %s946_s8 = smov %s846_s26  ;;  %s947_s9 = smov %s748_s11 }
 0x263   : > { %s948_s10 = smov %s752_s12  ;;  %s949_s11 = smov %s952_s15 }
 0x264   : > { %s950_s12 = smov %s956_s16  ;;  %14 = sbr.rel (!%p12_p4) target bundleno = 6 (0x6), region = 84 }
 0x269   :  { %467 = vsyncpa [#allocation4], 1 }
 0x26a   :  { %469 = vsyncpa [#allocation4 + $0x1], 1 }
 0x26b   :  { %470 = vsyncpa [#allocation5], 1 }
 0x26c   :  { %472 = vsyncpa [#allocation5 + $0x1], 1 }

</bundles_post_ra>
